<compile_context>
chip_gen: v7x
topology: tpu7x:2x2x1
jax: 0.10.0
libtpu: 0.0.40
codegen_flags: <defaults>
</compile_context>

<pallas_src>
import jax
import jax.numpy as jnp
from jax.experimental import pallas as pl
from jax.experimental.pallas import tpu as pltpu


# ----------------------------- Pallas kernels -----------------------------

def _ce_kernel_slab(logits_ref, tgt_ref, loss_ref):
    """Blocks: logits (C, TS, 128), target (TS, 128) int, loss (TS, 128) f32.

    loss[p] = logsumexp(logits[:, p]) - logits[target[p], p]

    Pixels live on sublanes+lanes; the class axis is the leading (statically
    unrolled) axis, so the max/sum over classes are elementwise VPU ops on fully
    packed (8,128) vregs and the temporaries stay (TS, 128)-sized regardless of
    how large the block is.
    """
    num_classes = logits_ref.shape[0]
    t = tgt_ref[...].astype(jnp.int32)                           # (TS, 128)

    m = logits_ref[0].astype(jnp.float32)                        # running max over classes
    for c in range(1, num_classes):
        m = jnp.maximum(m, logits_ref[c].astype(jnp.float32))

    s = jnp.zeros_like(m)                                        # sum_c exp(x_c - m)
    picked = jnp.zeros_like(m)                                   # x[target] - m
    for c in range(num_classes):
        xc = logits_ref[c].astype(jnp.float32) - m
        s = s + jnp.exp(xc)
        picked = picked + jnp.where(t == c, xc, 0.0)

    loss_ref[...] = jnp.log(s) - picked                          # (TS, 128), dense store


def _ce_kernel_flat(logits_ref, tgt_ref, loss_ref):
    """Fallback (HW % 128 != 0).  Blocks: logits (C, T), target (1, T), loss (1, T).

    Class axis on sublanes, pixel axis on lanes; lane-dense (1, T) output store.
    """
    x = logits_ref[...].astype(jnp.float32)                      # (C, T) in-vreg upcast
    t = tgt_ref[...].astype(jnp.int32)                           # (1, T)

    m = jnp.max(x, axis=0, keepdims=True)                        # (1, T)
    xm = x - m
    s = jnp.sum(jnp.exp(xm), axis=0, keepdims=True)              # (1, T)

    cls = jax.lax.broadcasted_iota(jnp.int32, x.shape, dimension=0)
    picked = jnp.sum(jnp.where(cls == t, xm, 0.0), axis=0, keepdims=True)

    loss_ref[...] = jnp.log(s) - picked


# ----------------------------- Tiling helpers -----------------------------

def _sublane_multiple(dtype):
    # sublane packing: 8 rows for 32-bit, 16 for 16-bit, 32 for 8-bit dtypes
    return max(8, 32 // jnp.dtype(dtype).itemsize)


def _scoped_vmem_limit_bytes():
    """Per-generation scoped-VMEM request: ~half of physical, capped at 48 MiB.

    v7x (64 MiB physical per TC) -> 32 MiB; v5e/v6e (128 MiB) -> 48 MiB.
    """
    try:
        cap = int(pltpu.get_tpu_info().vmem_capacity_bytes)
    except Exception:  # pragma: no cover - conservative fallback off-TPU / old jax
        cap = 64 << 20
    return max(16 << 20, min(cap // 2, 48 << 20))


def _pick_tile_pixels(vmem_limit_bytes, bytes_per_pixel):
    """Pixels per block such that buffers + temporaries use ~75% of scoped VMEM."""
    return max(256, (vmem_limit_bytes * 3 // 4) // max(1, bytes_per_pixel))


# ----------------------------- Per-pixel CE wrapper -----------------------------

def _per_pixel_ce(logits_nchw, target_nhw):
    """(N, C, H, W) logits (any float dtype) + (N, H, W) int labels -> (N*H*W,) f32 CE.

    Consumes NCHW directly: free reshapes only — no transpose, no pad copy, no dtype copy.
    """
    N, C, H, W = logits_nchw.shape
    HW = H * W
    l_isz = jnp.dtype(logits_nchw.dtype).itemsize
    t_isz = jnp.dtype(target_nhw.dtype).itemsize

    vmem_limit = _scoped_vmem_limit_bytes()
    cparams = pltpu.CompilerParams(
        dimension_semantics=("parallel", "parallel"),
        vmem_limit_bytes=vmem_limit)

    if HW % 128 == 0:
        # ---------- slab layout: pixels on sublanes + lanes ----------
        S = HW // 128
        logits = logits_nchw.reshape(N, C, S, 128)
        target = target_nhw.reshape(N, S, 128)

        # double-buffered logits/target/out blocks + ~8 (TS,128) f32 temporaries
        bpp = 2 * (C * l_isz + t_isz + 4) + 32
        mult = max(_sublane_multiple(logits.dtype), _sublane_multiple(target.dtype))
        ts = _pick_tile_pixels(vmem_limit, bpp) // 128
        if ts >= S:
            ts = S                                    # full dim: always a legal block
        else:
            ts = max(mult, (ts // mult) * mult)

        out = pl.pallas_call(
            _ce_kernel_slab,
            out_shape=jax.ShapeDtypeStruct((N, S, 128), jnp.float32),
            grid_spec=pltpu.PrefetchScalarGridSpec(
                num_scalar_prefetch=0,
                grid=(N, pl.cdiv(S, ts)),             # partial final block handled by Pallas
                in_specs=[
                    pl.BlockSpec((pl.Squeezed(), C, ts, 128),
                                 lambda n, i: (n, 0, i, 0)),
                    pl.BlockSpec((pl.Squeezed(), ts, 128),
                                 lambda n, i: (n, i, 0)),
                ],
                out_specs=pl.BlockSpec((pl.Squeezed(), ts, 128),
                                       lambda n, i: (n, i, 0)),
            ),
            compiler_params=cparams,
        )(logits, target)
        return out.reshape(-1)

    # ---------- fallback: class on sublanes, pixels on lanes (HW % 128 != 0) ----------
    logits = logits_nchw.reshape(N, C, HW)
    target = target_nhw.reshape(N, 1, HW)

    lm = _sublane_multiple(logits.dtype)
    c_pad = ((C + lm - 1) // lm) * lm
    # double-buffered blocks ((1,T) target/out pad to a full 8x32B sublane group)
    # + ~5 full-height temporaries inside the whole-block kernel
    bpp = 2 * (c_pad * l_isz + 32 + 32) + 5 * c_pad * 4
    t_hw = (_pick_tile_pixels(vmem_limit, bpp) // 128) * 128
    if t_hw >= HW:
        t_hw = HW                                     # full dim: legal even if HW % 128 != 0
    else:
        t_hw = max(128, t_hw)

    out = pl.pallas_call(
        _ce_kernel_flat,
        out_shape=jax.ShapeDtypeStruct((N, 1, HW), jnp.float32),
        grid_spec=pltpu.PrefetchScalarGridSpec(
            num_scalar_prefetch=0,
            grid=(N, pl.cdiv(HW, t_hw)),              # no pad: last block masked by Pallas
            in_specs=[
                pl.BlockSpec((pl.Squeezed(), C, t_hw), lambda n, i: (n, 0, i)),
                pl.BlockSpec((pl.Squeezed(), 1, t_hw), lambda n, i: (n, 0, i)),
            ],
            out_specs=pl.BlockSpec((pl.Squeezed(), 1, t_hw), lambda n, i: (n, 0, i)),
        ),
        compiler_params=cparams,
    )(logits, target)
    return out[:, 0, :].reshape(-1)


# ----------------------------- Bootstrapped (top-k) mean -----------------------------

def _topk_mean_from_threshold(loss, k):
    """Exact mean of the k largest entries of `loss` (all entries >= 0).

    Bisects on the f32 bit pattern (order-preserving for non-negative floats) to find
    the exact k-th largest value with ~32 O(P) count-reductions, then forms
      (sum(loss > thr) + (k - count(loss > thr)) * thr) / k
    which equals the exact top-k mean even with ties.  `k` is a traced scalar, so
    changing it during the warm ramp never retraces/recompiles.
    """
    loss = jnp.maximum(loss.astype(jnp.float32), 0.0)   # CE >= 0; clamp rounding noise
    n = loss.size
    k = jnp.clip(jnp.asarray(k, dtype=jnp.int32), 1, n)

    bits = jax.lax.bitcast_convert_type(loss, jnp.int32)
    lo0 = jnp.int32(0)                    # count(loss >= 0.0) == n >= k
    hi0 = jnp.max(bits)                   # bits of the max value

    def body(_, carry):
        lo, hi = carry
        mid = lo + (hi - lo + 1) // 2
        thr = jax.lax.bitcast_convert_type(mid, jnp.float32)
        ok = jnp.sum((loss >= thr).astype(jnp.int32)) >= k
        return (jnp.where(ok, mid, lo), jnp.where(ok, hi, mid - 1))

    kth_bits, _ = jax.lax.fori_loop(0, 32, body, (lo0, hi0))
    kth = jax.lax.bitcast_convert_type(kth_bits, jnp.float32)

    gt = loss > kth
    cnt_gt = jnp.sum(gt.astype(jnp.int32)).astype(jnp.float32)
    sum_gt = jnp.sum(jnp.where(gt, loss, 0.0))
    kf = k.astype(jnp.float32)
    return (sum_gt + (kf - cnt_gt) * kth) / kf


_per_pixel_ce_jit = jax.jit(_per_pixel_ce)
_topk_mean_jit = jax.jit(_topk_mean_from_threshold)


# ----------------------------- Module wrapper -----------------------------

class BootstrappedCE:
    def __init__(self, start_warm=0, end_warm=1, top_p=0.25):
        self.start_warm = start_warm
        self.end_warm = end_warm
        self.top_p = top_p

    def __call__(self, input_nchw, target_nhw, it):
        # input: (N, C, H, W) logits, target: (N, H, W) int labels, it: python int
        N, C, H, W = input_nchw.shape
        P = N * H * W

        raw_loss = _per_pixel_ce_jit(input_nchw, target_nhw)   # (P,) -- Pallas hot path

        if it < self.start_warm:
            return jnp.mean(raw_loss)

        if it > self.end_warm:
            this_p = self.top_p
        else:
            this_p = self.top_p + (1 - self.top_p) * (
                (self.end_warm - it) / (self.end_warm - self.start_warm))

        # k matches the reference int(num_pixels * this_p), clamped into [1, P];
        # it enters the selection only as a traced scalar -> no per-step recompiles.
        k = min(max(int(P * this_p), 1), P)
        # TODO(synk): no ignore_index handling (matches the reference module, which relies
        # on torch defaults and never passes ignore labels).
        return _topk_mean_jit(raw_loss, jnp.int32(k))


# ----------------------------- Demo -----------------------------

if __name__ == "__main__":
    key = jax.random.PRNGKey(0)
    k_logits, k_target = jax.random.split(key)

    N, C, H, W = 2, 4, 16, 16
    logits = jax.random.normal(k_logits, (N, C, H, W), dtype=jnp.float32)
    target = jax.random.randint(k_target, (N, H, W), 0, C, dtype=jnp.int32)

    loss_fn = BootstrappedCE(start_warm=0, end_warm=1, top_p=0.25)

    # it > end_warm  -> bootstrapped (top 25%) loss
    loss_boot = loss_fn(logits, target, it=5)
    # it == start_warm (= 0) -> interpolated this_p = 1.0 -> full-mean CE
    loss_warm = loss_fn(logits, target, it=0)

    jax.block_until_ready(loss_boot)
    jax.block_until_ready(loss_warm)

    # sanity check against pure-JAX reference
    log_probs = jax.nn.log_softmax(jnp.transpose(logits, (0, 2, 3, 1)), axis=-1)
    ref_raw = -jnp.take_along_axis(
        log_probs.reshape(-1, C), target.reshape(-1, 1), axis=-1)[:, 0]
    assert jnp.allclose(loss_warm, jnp.mean(ref_raw), atol=1e-5, rtol=1e-5)
    kk = int(ref_raw.size * 0.25)
    assert jnp.allclose(loss_boot, jnp.mean(jax.lax.top_k(ref_raw, kk)[0]),
                        atol=1e-5, rtol=1e-5)

    print("KERNEL_OK")
</pallas_src>

<mosaic_0001>
module attributes {stable_mosaic.version = 11 : i64} {
  func.func @_ce_kernel_slab(%arg0: i32, %arg1: i32, %arg2: memref<1x4x2x128xf32, #tpu.memory_space<vmem>>, %arg3: memref<1x2x128xi32, #tpu.memory_space<vmem>>, %arg4: memref<1x2x128xf32, #tpu.memory_space<vmem>>) attributes {dimension_semantics = [#tpu.dimension_semantics<parallel>, #tpu.dimension_semantics<parallel>], iteration_bounds = array<i64: 2, 1>, scalar_prefetch = 0 : i64, scratch_operands = 0 : i64, tpu.core_type = #tpu.core_type<tc>, window_params = [{transform_indices = @transform_0, window_bounds = array<i64: 1, 4, 2, 128>}, {transform_indices = @transform_1, window_bounds = array<i64: 1, 2, 128>}, {transform_indices = @transform_2, window_bounds = array<i64: 1, 2, 128>}]} {
    %c0 = arith.constant 0 : index
    %c0_0 = arith.constant 0 : index
    %c0_1 = arith.constant 0 : index
    %0 = vector.load %arg3[%c0, %c0_0, %c0_1] : memref<1x2x128xi32, #tpu.memory_space<vmem>>, vector<1x2x128xi32>
    %1 = vector.shape_cast %0 : vector<1x2x128xi32> to vector<2x128xi32>
    %c0_2 = arith.constant 0 : index
    %c0_3 = arith.constant 0 : index
    %c0_4 = arith.constant 0 : index
    %c0_5 = arith.constant 0 : index
    %2 = vector.load %arg2[%c0_2, %c0_3, %c0_4, %c0_5] : memref<1x4x2x128xf32, #tpu.memory_space<vmem>>, vector<1x1x2x128xf32>
    %3 = vector.shape_cast %2 : vector<1x1x2x128xf32> to vector<2x128xf32>
    %c0_6 = arith.constant 0 : index
    %c1 = arith.constant 1 : index
    %c0_7 = arith.constant 0 : index
    %c0_8 = arith.constant 0 : index
    %4 = vector.load %arg2[%c0_6, %c1, %c0_7, %c0_8] : memref<1x4x2x128xf32, #tpu.memory_space<vmem>>, vector<1x1x2x128xf32>
    %5 = vector.shape_cast %4 : vector<1x1x2x128xf32> to vector<2x128xf32>
    %6 = arith.maximumf %3, %5 : vector<2x128xf32>
    %c0_9 = arith.constant 0 : index
    %c2 = arith.constant 2 : index
    %c0_10 = arith.constant 0 : index
    %c0_11 = arith.constant 0 : index
    %7 = vector.load %arg2[%c0_9, %c2, %c0_10, %c0_11] : memref<1x4x2x128xf32, #tpu.memory_space<vmem>>, vector<1x1x2x128xf32>
    %8 = vector.shape_cast %7 : vector<1x1x2x128xf32> to vector<2x128xf32>
    %9 = arith.maximumf %6, %8 : vector<2x128xf32>
    %c0_12 = arith.constant 0 : index
    %c3 = arith.constant 3 : index
    %c0_13 = arith.constant 0 : index
    %c0_14 = arith.constant 0 : index
    %10 = vector.load %arg2[%c0_12, %c3, %c0_13, %c0_14] : memref<1x4x2x128xf32, #tpu.memory_space<vmem>>, vector<1x1x2x128xf32>
    %11 = vector.shape_cast %10 : vector<1x1x2x128xf32> to vector<2x128xf32>
    %12 = arith.maximumf %9, %11 : vector<2x128xf32>
    %cst = arith.constant 0.000000e+00 : f32
    %13 = vector.broadcast %cst : f32 to vector<2x128xf32>
    %cst_15 = arith.constant 0.000000e+00 : f32
    %14 = vector.broadcast %cst_15 : f32 to vector<2x128xf32>
    %c0_16 = arith.constant 0 : index
    %c0_17 = arith.constant 0 : index
    %c0_18 = arith.constant 0 : index
    %c0_19 = arith.constant 0 : index
    %15 = vector.load %arg2[%c0_16, %c0_17, %c0_18, %c0_19] : memref<1x4x2x128xf32, #tpu.memory_space<vmem>>, vector<1x1x2x128xf32>
    %16 = vector.shape_cast %15 : vector<1x1x2x128xf32> to vector<2x128xf32>
    %17 = arith.subf %16, %12 : vector<2x128xf32>
    %18 = math.exp %17 : vector<2x128xf32>
    %19 = arith.addf %13, %18 : vector<2x128xf32>
    %c0_i32 = arith.constant 0 : i32
    %20 = vector.broadcast %c0_i32 : i32 to vector<2x128xi32>
    %21 = arith.cmpi eq, %1, %20 : vector<2x128xi32>
    %cst_20 = arith.constant 0.000000e+00 : f32
    %22 = vector.broadcast %cst_20 : f32 to vector<2x128xf32>
    %23 = arith.select %21, %17, %22 : vector<2x128xi1>, vector<2x128xf32>
    %24 = arith.addf %14, %23 : vector<2x128xf32>
    %c0_21 = arith.constant 0 : index
    %c1_22 = arith.constant 1 : index
    %c0_23 = arith.constant 0 : index
    %c0_24 = arith.constant 0 : index
    %25 = vector.load %arg2[%c0_21, %c1_22, %c0_23, %c0_24] : memref<1x4x2x128xf32, #tpu.memory_space<vmem>>, vector<1x1x2x128xf32>
    %26 = vector.shape_cast %25 : vector<1x1x2x128xf32> to vector<2x128xf32>
    %27 = arith.subf %26, %12 : vector<2x128xf32>
    %28 = math.exp %27 : vector<2x128xf32>
    %29 = arith.addf %19, %28 : vector<2x128xf32>
    %c1_i32 = arith.constant 1 : i32
    %30 = vector.broadcast %c1_i32 : i32 to vector<2x128xi32>
    %31 = arith.cmpi eq, %1, %30 : vector<2x128xi32>
    %cst_25 = arith.constant 0.000000e+00 : f32
    %32 = vector.broadcast %cst_25 : f32 to vector<2x128xf32>
    %33 = arith.select %31, %27, %32 : vector<2x128xi1>, vector<2x128xf32>
    %34 = arith.addf %24, %33 : vector<2x128xf32>
    %c0_26 = arith.constant 0 : index
    %c2_27 = arith.constant 2 : index
    %c0_28 = arith.constant 0 : index
    %c0_29 = arith.constant 0 : index
    %35 = vector.load %arg2[%c0_26, %c2_27, %c0_28, %c0_29] : memref<1x4x2x128xf32, #tpu.memory_space<vmem>>, vector<1x1x2x128xf32>
    %36 = vector.shape_cast %35 : vector<1x1x2x128xf32> to vector<2x128xf32>
    %37 = arith.subf %36, %12 : vector<2x128xf32>
    %38 = math.exp %37 : vector<2x128xf32>
    %39 = arith.addf %29, %38 : vector<2x128xf32>
    %c2_i32 = arith.constant 2 : i32
    %40 = vector.broadcast %c2_i32 : i32 to vector<2x128xi32>
    %41 = arith.cmpi eq, %1, %40 : vector<2x128xi32>
    %cst_30 = arith.constant 0.000000e+00 : f32
    %42 = vector.broadcast %cst_30 : f32 to vector<2x128xf32>
    %43 = arith.select %41, %37, %42 : vector<2x128xi1>, vector<2x128xf32>
    %44 = arith.addf %34, %43 : vector<2x128xf32>
    %c0_31 = arith.constant 0 : index
    %c3_32 = arith.constant 3 : index
    %c0_33 = arith.constant 0 : index
    %c0_34 = arith.constant 0 : index
    %45 = vector.load %arg2[%c0_31, %c3_32, %c0_33, %c0_34] : memref<1x4x2x128xf32, #tpu.memory_space<vmem>>, vector<1x1x2x128xf32>
    %46 = vector.shape_cast %45 : vector<1x1x2x128xf32> to vector<2x128xf32>
    %47 = arith.subf %46, %12 : vector<2x128xf32>
    %48 = math.exp %47 : vector<2x128xf32>
    %49 = arith.addf %39, %48 : vector<2x128xf32>
    %c3_i32 = arith.constant 3 : i32
    %50 = vector.broadcast %c3_i32 : i32 to vector<2x128xi32>
    %51 = arith.cmpi eq, %1, %50 : vector<2x128xi32>
    %cst_35 = arith.constant 0.000000e+00 : f32
    %52 = vector.broadcast %cst_35 : f32 to vector<2x128xf32>
    %53 = arith.select %51, %47, %52 : vector<2x128xi1>, vector<2x128xf32>
    %54 = arith.addf %44, %53 : vector<2x128xf32>
    %55 = math.log %49 : vector<2x128xf32>
    %56 = arith.subf %55, %54 : vector<2x128xf32>
    %c0_36 = arith.constant 0 : index
    %c0_37 = arith.constant 0 : index
    %c0_38 = arith.constant 0 : index
    %57 = vector.load %arg4[%c0_36, %c0_37, %c0_38] : memref<1x2x128xf32, #tpu.memory_space<vmem>>, vector<1x2x128xf32>
    %58 = vector.shape_cast %57 : vector<1x2x128xf32> to vector<2x128xf32>
    %59 = vector.shape_cast %56 : vector<2x128xf32> to vector<1x2x128xf32>
    tpu.vector_store %arg4[%c0_36, %c0_37, %c0_38], %59 {strides = array<i32>} : memref<1x2x128xf32, #tpu.memory_space<vmem>>, vector<1x2x128xf32>,
    return
  }
  func.func @transform_0(%arg0: i32, %arg1: i32) -> (i32, i32, i32, i32) {
    %c0_i32 = arith.constant 0 : i32
    %c0_i32_0 = arith.constant 0 : i32
    %c0_i32_1 = arith.constant 0 : i32
    return %arg0, %c0_i32, %arg1, %c0_i32_0 : i32, i32, i32, i32
  }
  func.func @transform_1(%arg0: i32, %arg1: i32) -> (i32, i32, i32) {
    %c0_i32 = arith.constant 0 : i32
    %c0_i32_0 = arith.constant 0 : i32
    return %arg0, %arg1, %c0_i32 : i32, i32, i32
  }
  func.func @transform_2(%arg0: i32, %arg1: i32) -> (i32, i32, i32) {
    %c0_i32 = arith.constant 0 : i32
    %c0_i32_0 = arith.constant 0 : i32
    return %arg0, %arg1, %c0_i32 : i32, i32, i32
  }
}

</mosaic_0001>

<bundles_post_ra>
// kernel: _per_pixel_ce.1
= control target key start
LH: loop header
LB: loop body
LE: loop exit
PB: predicated region body
PF: predicated region fallthrough
CT: control target
= control target key end

     0   :  { %7 = vsyncpa [#allocation3], 0  ;;  %s635_s0 = inlined_call_operand.vmem [shape: f32[2,4,2,128], index: 0, kind: input, shape index: {}]   ;;  %s636_s1 = inlined_call_operand.vmem [shape: s32[2,2,128], index: 1, kind: input, shape index: {}]   ;;  %s637_s2 = inlined_call_operand.hbm [shape: f32[2,2,128], index: 2, kind: output, shape index: {}]  }
   0x1   :  { %9 = vsyncpa [#allocation3 + $0x1], 0  ;;  %s520_s9 = smov 0   ;;  %s522_s10 = smov 0  }
   0x2   :  { %s524_s11 = smov 0   ;;  %s526_s12 = smov 0  }
   0x3   :  { %s528_s13 = smov 0   ;;  %s530_s14 = smov 0  }
   0x4 LB: > { %s342_s15 = sadd.s32 4294967295, %s502_s14   ;;  %s343_s16 = sadd.s32 4294967294, %s502_s14   ;;  %s502_s14 = sphi %s530_s14, %s15_s14   ;;  %s498_s13 = sphi %s528_s13, %s644_s13   ;;  %s494_s12 = sphi %s526_s12, %s643_s12   ;;  %s490_s11 = sphi %s524_s11, %s642_s11   ;;  %s486_s10 = sphi %s522_s10, %s641_s10   ;;  %s482_s9 = sphi %s520_s9, %s640_s9  }
   0x5   : > { %s27_s17 = sadd.s32 1, %s498_s13  ;;  %s92_s18 = sadd.s32 1, %s490_s11 }
   0x6   : > { %p29_p0 = scmp.ge.s32.totalorder %s27_s17, 2  ;;  %p102_p1 = scmp.ne.s32.totalorder %s490_s11, %s486_s10 }
   0x7   : > { %p103_p2 = scmp.eq.s32.totalorder %s342_s15, 1  ;;  %p108_p3 = scmp.ne.s32.totalorder %s486_s10, %s482_s9 }
   0x8   : > { %s646_s17 = smov (%p29_p0, %s27_s17), 0  ;;  %p109_p5 = scmp.eq.s32.totalorder %s343_s16, 1 }
   0x9   : > { %p560_p4 = por %p103_p2, %p102_p1  ;;  %s87_s20 = ssub.s32 %s498_s13, %s646_s17 }
   0xa   : > { %p346_p6 = scmp.ge.s32.totalorder %s502_s14, 1  ;;  %p90_p7 = scmp.eq.s32.totalorder %s87_s20, 0 }
   0xb   : > { %p567_p8 = por %p109_p5, %p108_p3  ;;  %p148_p9 = scmp.lt.s32.totalorder %s502_s14, 3 }
   0xc   : > { %s573_s22 = scalar_select %p90_p7, %s490_s11, %s92_s18  }
   0xd   : > { %p149_p10 = pnand %p346_p6, %p148_p9 }
   0xe   : > { %p180_p11 = scmp.lt.s32.totalorder (!%p149_p10), %s494_s12, 1  ;;  %s177_s4 = sand.u32 (!%p149_p10), 1, %s486_s10  }
   0xf   : > { %152 = sbr.rel (%p149_p10) target bundleno = 84 (0x54), region = 28  ;;  %s347_s5 = sshll.u32 (!%p149_p10), %s177_s4, 1 }
  0x10   : > { %s179_s6 = scalar_lea.vmem (!%p149_p10), [#allocation2], %s347_s5  ;;  %s355_s8 = sshll.u32 (!%p149_p10), %s494_s12, 5 }
  0x11   : > { %s253_s7 = sshll.u32 (!%p149_p10), %s179_s6, 4  ;;  %s590_s18 = scalar_lea.hbm (!%p149_p10), %s637_s2, %s355_s8  ;;  %s585_s7 = int_to_ptr.vmem [resolvable:$true] %s253_s7 }
  0x12   : > { %s239_s20 = scalar_lea.sflag (!%p149_p10), [#allocation3], %s177_s4 }
  0x16   : > { %s181_s23 = scalar_select %p180_p11, %s494_s12, 1 }
  0x17   : > { %s504_s12 = smov [#allocation2]  }
  0x18   : > { %s358_s24 = sshll.u32 %s181_s23, 3  ;;  %s350_s28 = sshll.u32 %s181_s23, 1 }
  0x19   : > { %s187_s27 = scalar_lea.vmem %s635_s0, %s358_s24  ;;  %s194_s3 = scalar_lea.vmem %s636_s1, %s350_s28 }
  0x1a   : > { %v196_v0 = vld [vmem:[%s187_s27] sm:$0x3]  ;;  %v351_v1 = vld [vmem:[%s187_s27 + $0x2] sm:$0x3]  ;;  %v352_v3 = vld [vmem:[%s187_s27 + $0x4] sm:$0x3] }
  0x1b   : > { %v199_v2 = vmax.f32 %v196_v0, %v351_v1  ;;  %v353_v4 = vld [vmem:[%s187_s27 + $0x6] sm:$0x3]  ;;  %v195_v16 = vld [vmem:[%s194_s3] sm:$0x3]  ;;  %s424_s23 = scalar_lea.vmem %s585_s7, 32  ;;  %s428_s24 = sshll.u32 %s504_s12, 4  ;;  %s429_s24 = int_to_ptr.vmem [resolvable:$false] %s428_s24 }
  0x1c   : > { %vm210_vm0 = vcmp.eq.s32.totalorder %v195_v16, 0  ;;  %vm217_vm1 = vcmp.eq.s32.totalorder %v195_v16, 1  ;;  %vm224_vm2 = vcmp.eq.s32.totalorder %v195_v16, 2  ;;  %vm231_vm3 = vcmp.eq.s32.totalorder %v195_v16, 3  ;;  %p425_p12 = scmp.ne.s32.totalorder %s585_s7, %s424_s23  ;;  %s430_s25 = scalar_lea.vmem %s429_s24, 64 }
  0x1d   : > { %v202_v5 = vmax.f32 %v199_v2, %v352_v3  ;;  %p431_p1 = scmp.lt.s32.totalorder %s585_s7, %s429_s24  ;;  %p432_p2 = scmp.lt.s32.totalorder %s430_s25, %s424_s23 }
  0x1e   : > { %p426_p13 = pnand %p425_p12, %p560_p4 }
  0x1f   : > { %v205_v6 = vmax.f32 %v202_v5, %v353_v4  ;;  %p433_p3 = por %p432_p2, %p431_p1 }
  0x20   : > { %p427_p0 = pneg %p426_p13 }
  0x21   : > { %v206_v7 = vsub.f32 %v196_v0, %v205_v6  ;;  %v213_v8 = vsub.f32 %v351_v1, %v205_v6  ;;  %v220_v9 = vsub.f32 %v352_v3, %v205_v6  ;;  %v227_v10 = vsub.f32 %v353_v4, %v205_v6 }
  0x22   : > { %p434_p5 = pnand %p433_p3, %p427_p0 }
  0x23   : > { %v207_v11 = vmul.f32 1.442695, %v206_v7  ;;  %v214_v12 = vmul.f32 1.442695, %v213_v8  ;;  %v221_v13 = vmul.f32 1.442695, %v220_v9 }
  0x24   : > { %v228_v14 = vmul.f32 1.442695, %v227_v10  ;;  %v211_v22 = vsel %vm210_vm0, %v206_v7, 0.0  ;;  %v218_v23 = vsel %vm217_vm1, %v213_v8, 0.0  ;;  %v225_v26 = vsel %vm224_vm2, %v220_v9, 0.0 }
  0x25   : > { %414 = vpow2.f32 %v207_v11  ;;  %v219_v25 = vadd.f32 %v218_v23, %v211_v22  ;;  %v232_v28 = vsel %vm231_vm3, %v227_v10, 0.0 }
  0x26   : > { %416 = vpow2.f32 %v214_v12 }
  0x27   : > { %418 = vpow2.f32 %v221_v13  ;;  %v226_v27 = vadd.f32 %v225_v26, %v219_v25 }
  0x28   : > { %420 = vpow2.f32 %v228_v14 }
  0x29   : > { %v233_v29 = vadd.f32 %v232_v28, %v226_v27 }
  0x2f   : > { %v415_v15 = vpop.eup %414 }
  0x30   : > { %v417_v17 = vpop.eup %416 }
  0x31   : > { %v419_v18 = vpop.eup %418  ;;  %v216_v19 = vadd.f32 %v417_v17, %v415_v15 }
  0x32   : > { %v421_v20 = vpop.eup %420 }
  0x33   : > { %v223_v21 = vadd.f32 %v419_v18, %v216_v19 }
  0x35   : > { %v230_v24 = vadd.f32 %v421_v20, %v223_v21 }
  0x37   : > { %422 = vlog2.f32 %v230_v24 }
  0x41   : > { %v423_v30 = vpop.eup %422 }
  0x42   : > { %v235_v31 = vmul.f32 0.6931472, %v423_v30 }
  0x44   : > { %v236_v32 = vsub.f32 %v235_v31, %v233_v29 }
  0x46   : > { %237 = vst [vmem:[%s179_s6] sm:$0x3] %v236_v32 }
  0x47   : > { %437 = shalt.err (!%p434_p5)
}
  0x48   : > { %s438_s26 = scalar_lea.hbm %s590_s18, 32  ;;  %s442_s29 = scalar_lea.hbm %s637_s2, 64 }
  0x49   : > { %p439_p6 = scmp.ne.s32.totalorder %s590_s18, %s438_s26  ;;  %p443_p10 = scmp.lt.u32.totalorder %s590_s18, %s637_s2 }
  0x4a   : > { %p444_p11 = scmp.lt.u32.totalorder %s442_s29, %s438_s26  ;;  %p446_p13 = scmp.lt.u32.totalorder %s438_s26, %s590_s18 }
  0x4b   : > { %p440_p7 = pnand %p439_p6, %p560_p4 }
  0x4c   : > { %p445_p12 = por %p444_p11, %p443_p10 }
  0x4d   : > { %p441_p9 = pneg %p440_p7 }
  0x4e   : > { %p447_p0 = por %p446_p13, %p445_p12 }
  0x50   : > { %p448_p1 = pnand %p447_p0, %p441_p9 }
  0x52   : > { %451 = shalt.err (!%p448_p1)
}
  0x53   : > { %359 = dma.vmem_to_hbm [thread:$0]  (%p560_p4), %s585_s7, 32, %s590_s18, %s239_s20  }
  0x54 PF: > { %p365_p2 = scmp.ge.s32.totalorder %s502_s14, 2  ;;  %s265_s4 = sand.u32 1, %s482_s9  }
  0x55   : > { %s266_s5 = scalar_lea.sflag [#allocation3], %s265_s4 }
  0x56   : > { %p362_p3 = pnand %p365_p2, %p567_p8 }
  0x58   : > { %477 = dma.done.wait (!%p362_p3), %s266_s5, 32  }
  0x59   : > { %479 = vsyncadd (!%p362_p3), %s266_s5, 4294967264  ;;  %s15_s14 = sadd.s32 1, %s502_s14   ;;  %s640_s9 = smov %s486_s10 }
  0x5a   : > { %p12_p5 = scmp.ge.s32.totalorder %s15_s14, 4   ;;  %s641_s10 = smov %s490_s11 }
  0x5b   : > { %s642_s11 = smov %s573_s22  ;;  %s643_s12 = smov %s498_s13 }
  0x5c   : > { %s644_s13 = smov %s646_s17  ;;  %14 = sbr.rel (!%p12_p5) target bundleno = 4 (0x4), region = 69 }
  0x63   :  { %271 = vsyncpa [#allocation3], 1 }
  0x64   :  { %273 = vsyncpa [#allocation3 + $0x1], 1 }

</bundles_post_ra>
